<compile_context>
chip_gen: v7x
topology: tpu7x:2x2x1
jax: 0.10.0
libtpu: 0.0.40
codegen_flags: <defaults>
</compile_context>

<pallas_src>
import functools

import numpy as np
import jax
import jax.numpy as jnp
from jax.experimental import pallas as pl
from jax.experimental.pallas import tpu as pltpu


def _round_up(v, m):
    return (v + m - 1) // m * m


# ------------------------------ weight packing -------------------------------
def pack_weights(w1, w2):
    """Zero-pad w1/w2 ONCE to lane/sublane-aligned shapes.

    w1 -> (xpad, hpad), w2 -> (hpad, hpad); padded rows/cols are zero so
    zero-padded inputs contribute nothing (tanh(0) = 0 keeps the invariant).
    """
    n_input, n_hidden = w1.shape
    xpad = _round_up(max(n_input, 1), 128)
    hpad = _round_up(max(n_hidden, 1), 128)
    w1_p = jnp.zeros((xpad, hpad), jnp.float32)
    w1_p = w1_p.at[:n_input, :n_hidden].set(w1.astype(jnp.float32))
    w2_p = jnp.zeros((hpad, hpad), jnp.float32)
    w2_p = w2_p.at[:n_hidden, :n_hidden].set(w2.astype(jnp.float32))
    dims = (n_input, n_hidden, xpad, hpad)
    return w1_p, w2_p, dims


# -------------------------------- kernels ------------------------------------
def dfr_cell_kernel(x_ref, h_ref, w1_ref, w2_ref, out_ref, xs_scr, hs_scr,
                    *, n_input, n_hidden):
    """Single step: tanh(x @ w1 + h @ w2); padding/placement done in-kernel."""
    B = out_ref.shape[0]
    xs_scr[...] = jnp.zeros_like(xs_scr)
    hs_scr[...] = jnp.zeros_like(hs_scr)
    xs_scr[:B, :n_input] = x_ref[...].astype(jnp.float32)
    hs_scr[:B, :n_hidden] = h_ref[...].astype(jnp.float32)
    acc = (jnp.dot(xs_scr[...], w1_ref[...], preferred_element_type=jnp.float32)
           + jnp.dot(hs_scr[...], w2_ref[...], preferred_element_type=jnp.float32))
    out_ref[...] = jnp.tanh(acc)[:B, :n_hidden].astype(out_ref.dtype)


def dfr_seq_kernel(x_ref, h0_ref, w1_ref, w2_ref, out_ref, h_scr, xin_scr,
                   *, tc, n_input, unroll):
    """Tc timesteps per grid step; hidden state in vregs within the chunk,
    VMEM scratch across chunks.  Grid = (batch_tiles, time_chunks)."""
    c = pl.program_id(1)  # time-chunk axis (axis 0 is the parallel batch axis)

    @pl.when(c == 0)
    def _():
        h_scr[...] = h0_ref[...]
        # Padding lanes of the aligned x row stay exactly zero forever.
        xin_scr[...] = jnp.zeros_like(xin_scr)

    # Weights stay resident; hoist the loads out of the unrolled loop.
    w1 = w1_ref[...]
    w2 = w2_ref[...]

    def step_fn(t, h):
        # Place the unpadded x_t into the lane-aligned K position.
        xin_scr[:, :n_input] = x_ref[t]
        h_new = jnp.tanh(
            jnp.dot(xin_scr[...], w1, preferred_element_type=jnp.float32)
            + jnp.dot(h, w2, preferred_element_type=jnp.float32))
        out_ref[t] = h_new.astype(out_ref.dtype)
        return h_new

    h_scr[...] = jax.lax.fori_loop(0, tc, step_fn, h_scr[...], unroll=unroll)


# ------------------------------- wrappers -------------------------------------
def dfr_cell_forward(x, prev_output, w1_p, w2_p, dims):
    """Single-step cell (matches OriInitedDFRCell.forward). Returns (out, out)."""
    n_input, n_hidden, xpad, hpad = dims
    B = x.shape[0]
    bpad = _round_up(max(B, 1), 8)

    kernel = functools.partial(dfr_cell_kernel, n_input=n_input,
                               n_hidden=n_hidden)
    out = pl.pallas_call(
        kernel,
        out_shape=jax.ShapeDtypeStruct((B, n_hidden), x.dtype),
        in_specs=[
            pl.BlockSpec((B, n_input), lambda: (0, 0)),     # full-array blocks
            pl.BlockSpec((B, n_hidden), lambda: (0, 0)),
            pl.BlockSpec((xpad, hpad), lambda: (0, 0)),
            pl.BlockSpec((hpad, hpad), lambda: (0, 0)),
        ],
        out_specs=pl.BlockSpec((B, n_hidden), lambda: (0, 0)),
        scratch_shapes=[pltpu.VMEM((bpad, xpad), jnp.float32),
                        pltpu.VMEM((bpad, hpad), jnp.float32)],
        cost_estimate=pl.CostEstimate(
            flops=2 * bpad * (xpad + hpad) * hpad,
            transcendentals=bpad * hpad,
            bytes_accessed=4 * (B * (n_input + 2 * n_hidden)
                                + xpad * hpad + hpad * hpad),
        ),
    )(x, prev_output, w1_p, w2_p)
    return out, out


def dfr_sequence(xs, h0, w1_p, w2_p, dims, *, time_chunk=64, batch_tile=8):
    """Run the recurrence over a whole sequence in ONE pallas_call.

    xs: (T, B, n_input), h0: (B, n_hidden) -> hidden states (T, B, n_hidden).
    Weights stay resident in VMEM; x streamed unpadded; Tc steps per grid step.
    """
    n_input, n_hidden, xpad, hpad = dims
    T, B, _ = xs.shape

    bt = batch_tile
    bpad = _round_up(max(B, 1), bt)
    nb = bpad // bt
    tc = max(1, min(time_chunk, T))
    Tpad = _round_up(T, tc)
    nc = Tpad // tc
    unroll = True if tc <= 16 else 8

    # Stream xs unpadded in the feature dim (full last dim -> (8,128) exempt).
    xs_p = jnp.zeros((Tpad, bpad, n_input), jnp.float32)
    xs_p = xs_p.at[:T, :B, :].set(xs.astype(jnp.float32))
    h0_p = jnp.zeros((bpad, hpad), jnp.float32)
    h0_p = h0_p.at[:B, :n_hidden].set(h0.astype(jnp.float32))

    # VMEM budget: double-buffered streamed blocks + resident weights + scratch.
    vmem_need = 4 * (2 * tc * bt * (n_input + hpad)   # x / out blocks (x2 buffers)
                     + 2 * bt * hpad                   # h0
                     + xpad * hpad + hpad * hpad       # resident weights
                     + bt * (xpad + hpad))             # scratch
    vmem_limit = int(min(64 << 20, max(3 * vmem_need, 32 << 20)))

    kernel = functools.partial(dfr_seq_kernel, tc=tc, n_input=n_input,
                               unroll=unroll)
    out = pl.pallas_call(
        kernel,
        out_shape=jax.ShapeDtypeStruct((Tpad, bpad, hpad), jnp.float32),
        grid=(nb, nc),
        in_specs=[
            pl.BlockSpec((tc, bt, n_input), lambda b, c: (c, b, 0)),  # x streamed
            pl.BlockSpec((bt, hpad), lambda b, c: (b, 0)),            # h0
            pl.BlockSpec((xpad, hpad), lambda b, c: (0, 0)),          # w1 resident
            pl.BlockSpec((hpad, hpad), lambda b, c: (0, 0)),          # w2 resident
        ],
        out_specs=pl.BlockSpec((tc, bt, hpad), lambda b, c: (c, b, 0)),
        scratch_shapes=[pltpu.VMEM((bt, hpad), jnp.float32),   # carried hidden
                        pltpu.VMEM((bt, xpad), jnp.float32)],  # aligned x row
        compiler_params=pltpu.CompilerParams(
            dimension_semantics=("parallel", "arbitrary"),
            vmem_limit_bytes=vmem_limit),
        cost_estimate=pl.CostEstimate(
            flops=2 * Tpad * bpad * (xpad + hpad) * hpad,
            transcendentals=Tpad * bpad * hpad,
            bytes_accessed=4 * (Tpad * bpad * (n_input + hpad)
                                + bpad * hpad
                                + xpad * hpad + hpad * hpad),
        ),
    )(xs_p, h0_p, w1_p, w2_p)

    return out[:T, :B, :n_hidden].astype(xs.dtype)


# --------------------- deterministic parameter init ---------------------------
def init_params(n_input, n_hidden, seed=0):
    """Mirrors OriInitedDFRCell.__init__ (synthetic, deterministic)."""
    rng = np.random.RandomState(seed)
    w1 = rng.uniform(-1.0, 1.0, size=(n_input, n_hidden)).astype(np.float32)
    w2 = rng.uniform(-0.5, 0.5, size=(n_hidden, n_hidden)).astype(np.float32)
    drop = rng.rand(n_hidden, n_hidden) < 0.4
    w2[drop] = 0.0
    radius = np.max(np.abs(np.linalg.eigvals(w2.astype(np.float64))))
    w2 = (w2 * 0.2 / radius).astype(np.float32)
    return jnp.asarray(w1), jnp.asarray(w2)


# ----------------------------------- main --------------------------------------
if __name__ == "__main__":
    n_input, n_hidden, batch, seq_len = 16, 32, 2, 8

    w1, w2 = init_params(n_input, n_hidden, seed=0)
    w1_p, w2_p, dims = pack_weights(w1, w2)

    key = jax.random.PRNGKey(0)
    kx, kh, ks = jax.random.split(key, 3)
    x = jax.random.normal(kx, (batch, n_input), dtype=jnp.float32)
    prev = jax.random.normal(kh, (batch, n_hidden), dtype=jnp.float32)

    # ---- single-step cell (module's forward) ----
    cell = jax.jit(functools.partial(dfr_cell_forward,
                                     w1_p=w1_p, w2_p=w2_p, dims=dims))
    out, out2 = cell(x, prev)
    jax.block_until_ready(out)

    ref = jnp.tanh(x @ w1 + prev @ w2)
    np.testing.assert_allclose(np.asarray(out), np.asarray(ref),
                               rtol=1e-5, atol=1e-5)
    assert out.shape == (batch, n_hidden)
    assert np.array_equal(np.asarray(out), np.asarray(out2))

    # ---- recurrent sequence driven entirely inside one kernel ----
    xs = jax.random.normal(ks, (seq_len, batch, n_input), dtype=jnp.float32)
    h0 = jnp.zeros((batch, n_hidden), jnp.float32)
    seq = jax.jit(functools.partial(dfr_sequence,
                                    w1_p=w1_p, w2_p=w2_p, dims=dims))
    hs = seq(xs, h0)
    jax.block_until_ready(hs)

    def ref_step(h, xt):
        h_new = jnp.tanh(xt @ w1 + h @ w2)
        return h_new, h_new

    _, hs_ref = jax.lax.scan(ref_step, h0, xs)
    np.testing.assert_allclose(np.asarray(hs), np.asarray(hs_ref),
                               rtol=1e-4, atol=1e-4)
    assert hs.shape == (seq_len, batch, n_hidden)

    print("KERNEL_OK")
</pallas_src>

<mosaic_0001>
module attributes {stable_mosaic.version = 11 : i64} {
  func.func @dfr_cell_kernel(%arg0: memref<2x16xf32, #tpu.memory_space<vmem>>, %arg1: memref<2x32xf32, #tpu.memory_space<vmem>>, %arg2: memref<128x128xf32, #tpu.memory_space<vmem>>, %arg3: memref<128x128xf32, #tpu.memory_space<vmem>>, %arg4: memref<2x32xf32, #tpu.memory_space<vmem>>, %arg5: memref<8x128xf32, #tpu.memory_space<vmem>>, %arg6: memref<8x128xf32, #tpu.memory_space<vmem>>) attributes {dimension_semantics = [], scalar_prefetch = 0 : i64, scratch_operands = 2 : i64, tpu.core_type = #tpu.core_type<tc>} {
    %cst = arith.constant 0.000000e+00 : f32
    %0 = vector.broadcast %cst : f32 to vector<8x128xf32>
    %c0 = arith.constant 0 : index
    %c0_0 = arith.constant 0 : index
    %1 = vector.load %arg5[%c0, %c0_0] : memref<8x128xf32, #tpu.memory_space<vmem>>, vector<8x128xf32>
    tpu.vector_store %arg5[%c0, %c0_0], %0 {strides = array<i32>} : memref<8x128xf32, #tpu.memory_space<vmem>>, vector<8x128xf32>,
    %cst_1 = arith.constant 0.000000e+00 : f32
    %2 = vector.broadcast %cst_1 : f32 to vector<8x128xf32>
    %c0_2 = arith.constant 0 : index
    %c0_3 = arith.constant 0 : index
    %3 = vector.load %arg6[%c0_2, %c0_3] : memref<8x128xf32, #tpu.memory_space<vmem>>, vector<8x128xf32>
    tpu.vector_store %arg6[%c0_2, %c0_3], %2 {strides = array<i32>} : memref<8x128xf32, #tpu.memory_space<vmem>>, vector<8x128xf32>,
    %c0_4 = arith.constant 0 : index
    %c0_5 = arith.constant 0 : index
    %4 = vector.load %arg0[%c0_4, %c0_5] : memref<2x16xf32, #tpu.memory_space<vmem>>, vector<2x16xf32>
    %c0_6 = arith.constant 0 : index
    %c0_7 = arith.constant 0 : index
    %5 = vector.load %arg5[%c0_6, %c0_7] : memref<8x128xf32, #tpu.memory_space<vmem>>, vector<2x16xf32>
    tpu.vector_store %arg5[%c0_6, %c0_7], %4 {strides = array<i32>} : memref<8x128xf32, #tpu.memory_space<vmem>>, vector<2x16xf32>,
    %c0_8 = arith.constant 0 : index
    %c0_9 = arith.constant 0 : index
    %6 = vector.load %arg1[%c0_8, %c0_9] : memref<2x32xf32, #tpu.memory_space<vmem>>, vector<2x32xf32>
    %c0_10 = arith.constant 0 : index
    %c0_11 = arith.constant 0 : index
    %7 = vector.load %arg6[%c0_10, %c0_11] : memref<8x128xf32, #tpu.memory_space<vmem>>, vector<2x32xf32>
    tpu.vector_store %arg6[%c0_10, %c0_11], %6 {strides = array<i32>} : memref<8x128xf32, #tpu.memory_space<vmem>>, vector<2x32xf32>,
    %c0_12 = arith.constant 0 : index
    %c0_13 = arith.constant 0 : index
    %8 = vector.load %arg5[%c0_12, %c0_13] : memref<8x128xf32, #tpu.memory_space<vmem>>, vector<8x128xf32>
    %c0_14 = arith.constant 0 : index
    %c0_15 = arith.constant 0 : index
    %9 = vector.load %arg2[%c0_14, %c0_15] : memref<128x128xf32, #tpu.memory_space<vmem>>, vector<128x128xf32>
    %cst_16 = arith.constant dense<0.000000e+00> : vector<8x128xf32>
    %10 = tpu.matmul %8, %9, %cst_16 {dimension_numbers = #tpu.dot_dimension_numbers<[1], [0], [0], [1], [0, 0, 1, 1], [], []>} : vector<8x128xf32>, vector<128x128xf32>, vector<8x128xf32> -> vector<8x128xf32>
    %c0_17 = arith.constant 0 : index
    %c0_18 = arith.constant 0 : index
    %11 = vector.load %arg6[%c0_17, %c0_18] : memref<8x128xf32, #tpu.memory_space<vmem>>, vector<8x128xf32>
    %c0_19 = arith.constant 0 : index
    %c0_20 = arith.constant 0 : index
    %12 = vector.load %arg3[%c0_19, %c0_20] : memref<128x128xf32, #tpu.memory_space<vmem>>, vector<128x128xf32>
    %cst_21 = arith.constant dense<0.000000e+00> : vector<8x128xf32>
    %13 = tpu.matmul %11, %12, %cst_21 {dimension_numbers = #tpu.dot_dimension_numbers<[1], [0], [0], [1], [0, 0, 1, 1], [], []>} : vector<8x128xf32>, vector<128x128xf32>, vector<8x128xf32> -> vector<8x128xf32>
    %14 = arith.addf %10, %13 : vector<8x128xf32>
    %15 = math.tanh %14 : vector<8x128xf32>
    %16 = vector.extract_strided_slice %15 {offsets = [0, 0], sizes = [2, 32], strides = [1, 1]} : vector<8x128xf32> to vector<2x32xf32>
    %c0_22 = arith.constant 0 : index
    %c0_23 = arith.constant 0 : index
    %17 = vector.load %arg4[%c0_22, %c0_23] : memref<2x32xf32, #tpu.memory_space<vmem>>, vector<2x32xf32>
    tpu.vector_store %arg4[%c0_22, %c0_23], %16 {strides = array<i32>} : memref<2x32xf32, #tpu.memory_space<vmem>>, vector<2x32xf32>,
    return
  }
}

</mosaic_0001>

<bundles_post_ra>
// kernel: dfr_cell_forward.1
= control target key start
LH: loop header
LB: loop body
LE: loop exit
PB: predicated region body
PF: predicated region fallthrough
CT: control target
= control target key end

     0   :  { %9 = vsyncpa [#allocation5], 0  ;;  %s578_s0 = inlined_call_operand.hbm [shape: f32[2,16], index: 0, kind: input, shape index: {}]   ;;  %s579_s1 = inlined_call_operand.vmem [shape: f32[2,32], index: 1, kind: input, shape index: {}]   ;;  %s580_s2 = inlined_call_operand.hbm [shape: f32[128,128], index: 2, kind: input, shape index: {}]   ;;  %s581_s3 = inlined_call_operand.hbm [shape: f32[128,128], index: 3, kind: input, shape index: {}]   ;;  %s582_s4 = inlined_call_operand.vmem [shape: f32[2,32], index: 4, kind: output, shape index: {}]  }
   0x1   :  { %10 = vsyncpa [#allocation7], 0  ;;  %s479_s15 = smov [#allocation6]   ;;  %s409_s19 = scalar_lea.hbm %s580_s2, 2048 }
   0x2   :  { %s28_s16 = sshll.u32 %s479_s15, 4  ;;  %p410_p0 = scmp.ne.s32.totalorder %s580_s2, %s409_s19  ;;  %s29_s16 = int_to_ptr.vmem [resolvable:$true] %s28_s16 }
   0x3   :  { %p413_p1 = scmp.lt.u32.totalorder %s409_s19, %s580_s2 }
   0x5   :  { %p415_p2 = pnand %p413_p1, %p410_p0 }
   0x7   :  { %418 = shalt.err (!%p415_p2)
}
   0x8   :  { %s419_s24 = scalar_lea.vmem %s29_s16, 2048  ;;  %p424_p4 = scmp.lt.s32.totalorder %s29_s16, %s29_s16 }
   0x9   :  { %p420_p3 = scmp.ne.s32.totalorder %s29_s16, %s419_s24  ;;  %p425_p5 = scmp.lt.s32.totalorder %s419_s24, %s419_s24 }
   0xb   :  { %p426_p6 = por %p425_p5, %p424_p4 }
   0xd   :  { %p427_p7 = pnand %p426_p6, %p420_p3 }
   0xf   :  { %430 = shalt.err (!%p427_p7)
}
  0x10   :  { %s480_s25 = smov 128   ;;  %s481_s26 = smov 8  }
  0x11   :  { %34 = dma.hbm_to_vmem [thread:$0]  %s580_s2, 2048, %s29_s16, [#allocation7], %s480_s25, %s480_s25, %s481_s26  }
  0x12   :  { %s482_s29 = smov [#allocation4]   ;;  %s483_s5 = smov [#allocation8]  }
  0x13   :  { %s17_s30 = sshll.u32 %s482_s29, 4  ;;  %s40_s6 = sshll.u32 %s483_s5, 4  ;;  %s18_s30 = int_to_ptr.vmem [resolvable:$true] %s17_s30  ;;  %s41_s6 = int_to_ptr.vmem [resolvable:$true] %s40_s6 }
  0x14   :  { %s431_s9 = scalar_lea.hbm %s578_s0, 32 }
  0x15   :  { %p432_p8 = scmp.ne.s32.totalorder %s578_s0, %s431_s9  ;;  %p435_p9 = scmp.lt.u32.totalorder %s431_s9, %s578_s0 }
  0x17   :  { %p437_p10 = pnand %p435_p9, %p432_p8 }
  0x19   :  { %440 = shalt.err (!%p437_p10)
}
  0x1a   :  { %s441_s2 = scalar_lea.vmem %s18_s30, 32  ;;  %p446_p12 = scmp.lt.s32.totalorder %s18_s30, %s18_s30 }
  0x1b   :  { %p442_p11 = scmp.ne.s32.totalorder %s18_s30, %s441_s2  ;;  %p447_p13 = scmp.lt.s32.totalorder %s441_s2, %s441_s2 }
  0x1d   :  { %p448_p0 = por %p447_p13, %p446_p12 }
  0x1f   :  { %p449_p1 = pnand %p448_p0, %p442_p11 }
  0x21   :  { %452 = shalt.err (!%p449_p1)
}
  0x22   :  { %20 = dma.hbm_to_vmem [thread:$0]  %s578_s0, 32, %s18_s30, [#allocation5]  }
  0x23   :  { %s453_s18 = scalar_lea.hbm %s581_s3, 2048 }
  0x24   :  { %p454_p2 = scmp.ne.s32.totalorder %s581_s3, %s453_s18  ;;  %p457_p3 = scmp.lt.u32.totalorder %s453_s18, %s581_s3 }
  0x26   :  { %p459_p4 = pnand %p457_p3, %p454_p2 }
  0x28   :  { %462 = shalt.err (!%p459_p4)
}
  0x29   :  { %s463_s23 = scalar_lea.vmem %s41_s6, 2048  ;;  %p468_p6 = scmp.lt.s32.totalorder %s41_s6, %s41_s6 }
  0x2a   :  { %p464_p5 = scmp.ne.s32.totalorder %s41_s6, %s463_s23  ;;  %p469_p7 = scmp.lt.s32.totalorder %s463_s23, %s463_s23 }
  0x2c   :  { %p470_p8 = por %p469_p7, %p468_p6 }
  0x2e   :  { %p471_p9 = pnand %p470_p8, %p464_p5 }
  0x30   :  { %474 = shalt.err (!%p471_p9)
}
  0x31   :  { %46 = dma.hbm_to_vmem [thread:$0]  %s581_s3, 2048, %s41_s6, [#allocation7], %s480_s25, %s480_s25, %s481_s26  }
  0x32   :  { %475 = dma.done.wait [#allocation5], 32  }
  0x33   :  { %476 = vsyncadd [#allocation5], 4294967264 }
  0x34   :  { %477 = dma.done.wait [#allocation7], 4096  }
  0x35   :  { %478 = vsyncadd [#allocation7], 4294963200  ;;  %v484_v0 = vmov 0.0|0.0   ;;  %v485_v1 = vmov 0.0   ;;  %vm486_vm0 = vmmov 0   ;;  %v82_v2 = vld [vmem:[#allocation8] sm:$0xff] }
  0x36   :  { %350 = vmatprep.subr.bf16.mxu1 %v484_v0  ;;  %374 = vmatprep.subr.bf16.mxu0 %v484_v0  ;;  %56 = vst [vmem:[#allocation2] sm:$0xff] %v485_v1  ;;  %57 = vst [vmem:[#allocation3] sm:$0xff] %v485_v1  ;;  %v83_v3 = vld [vmem:[#allocation8 + $0x8] sm:$0xff]  ;;  %v65_v4 = vld [vmem:[#allocation6] sm:$0xff]  ;;  %vm59_vm1 = vcmask 123904   ;;  %vm62_vm2 = vcmask 254976  }
  0x37   :  { %312 = vmatprep.mubr.msk.f32.mxu1 %vm486_vm0, %v485_v1  ;;  %347 = vmatprep.mubr.msk.f32.mxu0 %vm486_vm0, %v485_v1  ;;  %v351_v5 = vpack.c.bf16 %v83_v3, %v82_v2  ;;  %v66_v6 = vld [vmem:[#allocation6 + $0x8] sm:$0xff]  ;;  %v84_v7 = vld [vmem:[#allocation8 + $0x10] sm:$0xff]  ;;  %v85_v8 = vld [vmem:[#allocation8 + $0x18] sm:$0xff] }
  0x38   :  { %v375_v9 = vpack.c.bf16 %v66_v6, %v65_v4  ;;  %v67_v10 = vld [vmem:[#allocation6 + $0x10] sm:$0xff]  ;;  %v68_v11 = vld [vmem:[#allocation6 + $0x18] sm:$0xff]  ;;  %v354_v12 = vpack.c.bf16 %v85_v8, %v84_v7  ;;  %v86_v14 = vld [vmem:[#allocation8 + $0x20] sm:$0xff] }
  0x39   :  { %352 = vmatpush3.bf16.msra.mxu1 %v351_v5  ;;  %v378_v13 = vpack.c.bf16 %v68_v11, %v67_v10  ;;  %v87_v15 = vld [vmem:[#allocation8 + $0x28] sm:$0xff]  ;;  %v69_v16 = vld [vmem:[#allocation6 + $0x20] sm:$0xff]  ;;  %v88_v20 = vld [vmem:[#allocation8 + $0x30] sm:$0xff] }
  0x3a   :  { %376 = vmatpush3.bf16.msra.mxu0 %v375_v9  ;;  %353 = vmatprep.subr.bf16.mxu1 %v484_v0  ;;  %v70_v17 = vld [vmem:[#allocation6 + $0x28] sm:$0xff]  ;;  %v357_v18 = vpack.c.bf16 %v87_v15, %v86_v14  ;;  %v89_v21 = vld [vmem:[#allocation8 + $0x38] sm:$0xff]  ;;  %v71_v22 = vld [vmem:[#allocation6 + $0x30] sm:$0xff] }
  0x3b   :  { %377 = vmatprep.subr.bf16.mxu0 %v484_v0  ;;  %v381_v19 = vpack.c.bf16 %v70_v17, %v69_v16  ;;  %v72_v23 = vld [vmem:[#allocation6 + $0x38] sm:$0xff]  ;;  %v360_v25 = vpack.c.bf16 %v89_v21, %v88_v20  ;;  %v61_v26 = vld [vmem:[%s579_s1] sm:$0x3]  ;;  %v91_v29 = vld [vmem:[#allocation8 + $0x48] sm:$0xff] }
  0x3c   :  { %v58_v24 = vld [vmem:[#allocation4] sm:$0x3]  ;;  %v384_v27 = vpack.c.bf16 %v72_v23, %v71_v22  ;;  %v90_v28 = vld [vmem:[#allocation8 + $0x40] sm:$0xff]  ;;  %63 = vst.msk [vmem:[#allocation3] sm:$0x3] %vm62_vm2, %v61_v26  ;;  %v74_v31 = vld [vmem:[#allocation6 + $0x48] sm:$0xff] }
  0x3d   :  { %355 = vmatpush3.bf16.msra.mxu1 %v354_v12  ;;  %60 = vst.msk [vmem:[#allocation2] sm:$0x3] %vm59_vm1, %v58_v24  ;;  %v73_v30 = vld [vmem:[#allocation6 + $0x40] sm:$0xff]  ;;  %v363_v32 = vpack.c.bf16 %v91_v29, %v90_v28  ;;  %v92_v34 = vld [vmem:[#allocation8 + $0x50] sm:$0xff]  ;;  %v93_v35 = vld [vmem:[#allocation8 + $0x58] sm:$0xff] }
  0x3e   :  { %379 = vmatpush3.bf16.msra.mxu0 %v378_v13  ;;  %356 = vmatprep.subr.bf16.mxu1 %v484_v0  ;;  %v387_v33 = vpack.c.bf16 %v74_v31, %v73_v30  ;;  %v75_v36 = vld [vmem:[#allocation6 + $0x50] sm:$0xff]  ;;  %v76_v37 = vld [vmem:[#allocation6 + $0x58] sm:$0xff]  ;;  %v366_v38 = vpack.c.bf16 %v93_v35, %v92_v34  ;;  %v94_v40 = vld [vmem:[#allocation8 + $0x60] sm:$0xff] }
  0x3f   :  { %380 = vmatprep.subr.bf16.mxu0 %v484_v0  ;;  %v390_v39 = vpack.c.bf16 %v76_v37, %v75_v36  ;;  %v95_v41 = vld [vmem:[#allocation8 + $0x68] sm:$0xff]  ;;  %v77_v42 = vld [vmem:[#allocation6 + $0x60] sm:$0xff]  ;;  %v96_v46 = vld [vmem:[#allocation8 + $0x70] sm:$0xff] }
  0x40   :  { %v78_v43 = vld [vmem:[#allocation6 + $0x68] sm:$0xff]  ;;  %v369_v44 = vpack.c.bf16 %v95_v41, %v94_v40  ;;  %v97_v47 = vld [vmem:[#allocation8 + $0x78] sm:$0xff]  ;;  %v79_v48 = vld [vmem:[#allocation6 + $0x70] sm:$0xff] }
  0x41   :  { %358 = vmatpush3.bf16.msra.mxu1 %v357_v18  ;;  %v393_v45 = vpack.c.bf16 %v78_v43, %v77_v42  ;;  %v80_v49 = vld [vmem:[#allocation6 + $0x78] sm:$0xff]  ;;  %v372_v50 = vpack.c.bf16 %v97_v47, %v96_v46 }
  0x42   :  { %382 = vmatpush3.bf16.msra.mxu0 %v381_v19  ;;  %359 = vmatprep.subr.bf16.mxu1 %v484_v0  ;;  %v396_v51 = vpack.c.bf16 %v80_v49, %v79_v48 }
  0x43   :  { %383 = vmatprep.subr.bf16.mxu0 %v484_v0  ;;  %v81_v52 = vld [vmem:[#allocation3] sm:$0xff] }
  0x44   :  { %v64_v53 = vld [vmem:[#allocation2] sm:$0xff] }
  0x45   :  { %361 = vmatpush3.bf16.msra.mxu1 %v360_v25 }
  0x46   :  { %385 = vmatpush3.bf16.msra.mxu0 %v384_v27  ;;  %362 = vmatprep.subr.bf16.mxu1 %v484_v0 }
  0x47   :  { %386 = vmatprep.subr.bf16.mxu0 %v484_v0 }
  0x49   :  { %364 = vmatpush3.bf16.msra.mxu1 %v363_v32 }
  0x4a   :  { %388 = vmatpush3.bf16.msra.mxu0 %v387_v33  ;;  %365 = vmatprep.subr.bf16.mxu1 %v484_v0 }
  0x4b   :  { %389 = vmatprep.subr.bf16.mxu0 %v484_v0 }
  0x4d   :  { %367 = vmatpush3.bf16.msra.mxu1 %v366_v38 }
  0x4e   :  { %391 = vmatpush3.bf16.msra.mxu0 %v390_v39  ;;  %368 = vmatprep.subr.bf16.mxu1 %v484_v0 }
  0x4f   :  { %392 = vmatprep.subr.bf16.mxu0 %v484_v0 }
  0x51   :  { %370 = vmatpush3.bf16.msra.mxu1 %v369_v44 }
  0x52   :  { %394 = vmatpush3.bf16.msra.mxu0 %v393_v45  ;;  %371 = vmatprep.subr.bf16.mxu1 %v484_v0 }
  0x53   :  { %395 = vmatprep.subr.bf16.mxu0 %v484_v0 }
  0x55   :  { %373 = vmatpush3.bf16.msra.mxu1 %v372_v50 }
  0x56   :  { %397 = vmatpush3.bf16.msra.mxu0 %v396_v51 }
  0x58   :  { %313 = vmatmul.mubr.f32.vlgmr.msra.gmra.mrb[0].mxu1 %v81_v52 }
  0x59   :  { %348 = vmatmul.mubr.f32.vlgmr.msra.gmra.mrb[0].mxu0 %v64_v53 }
 0x12b   :  { %v164_v54 = vpop.f32.mrb[0].mxu1 }
 0x12c   :  { %v234_v55 = vpop.f32.mrb[0].mxu0  ;;  %v314_v56 = vpop.f32.mrb[1].mxu1 }
 0x12d   :  { %v235_v57 = vadd.f32 %v234_v55, %v164_v54  ;;  %v349_v58 = vpop.f32.mrb[1].mxu0 }
 0x12f   :  { %407 = vtanh.f32 %v235_v57 }
 0x139   :  { %v408_v59 = vpop.eup %407 }
 0x13a   :  { %239 = vst.msk [vmem:[%s582_s4] sm:$0x3] %vm62_vm2, %v408_v59 }
 0x13b   :  { %244 = vsyncpa [#allocation5], 1 }
 0x13c   :  { %245 = vsyncpa [#allocation7], 1 }

</bundles_post_ra>
